<compile_context>
chip_gen: v7x
topology: tpu7x:2x2x1
jax: 0.10.0
libtpu: 0.0.40
codegen_flags: <defaults>
</compile_context>

<pallas_src>
import math
import functools

import jax
import jax.numpy as jnp
from jax import lax
from jax.experimental import pallas as pl
from jax.experimental.pallas import tpu as pltpu


def _attn_kernel(x_ref, wq_ref, wk_ref, wv_ref, bq_ref, bk_ref, bv_ref,
                 wproj_ref, bproj_ref, o_ref, k_scr, v_scr,
                 *, n_head, head_size, scale, compute_dtype):
    """One grid step = (batch b, query tile qi); kv tiles are looped in-kernel."""
    qi = pl.program_id(1)
    tq = o_ref.shape[1]
    C = o_ref.shape[2]
    hs = head_size
    cdt = compute_dtype

    # ---- fill the per-head K/V cache once per batch (first q tile) ---------
    @pl.when(qi == 0)
    def _fill_kv():
        xc = x_ref[0]                                            # (T, C), cdt
        k_all = jnp.maximum(
            jnp.dot(xc, wk_ref[...], preferred_element_type=jnp.float32)
            + bk_ref[...], 0.0)                                  # (T, C) f32
        v_all = jnp.maximum(
            jnp.dot(xc, wv_ref[...], preferred_element_type=jnp.float32)
            + bv_ref[...], 0.0)
        for h in range(n_head):          # one-off scatter into per-head layout
            k_scr[h] = k_all[:, h * hs:(h + 1) * hs].astype(cdt)
            v_scr[h] = v_all[:, h * hs:(h + 1) * hs].astype(cdt)

    # ---- project this q tile for all heads at once (lane-dense, N = C) -----
    q_start = pl.multiple_of(qi * tq, tq)
    xq = x_ref[0, pl.ds(q_start, tq), :]                         # (tq, C), cdt
    q_all = jnp.maximum(
        jnp.dot(xq, wq_ref[...], preferred_element_type=jnp.float32)
        + bq_ref[...], 0.0) * scale              # fold 1/sqrt(hs) into relu(q)
    q_all = q_all.astype(cdt)

    # causal mask is only needed for the diagonal kv tile
    row = lax.broadcasted_iota(jnp.int32, (tq, tq), 0)
    col = lax.broadcasted_iota(jnp.int32, (tq, tq), 1)
    diag_mask = col <= row

    out = jnp.zeros((tq, C), jnp.float32)
    for h in range(n_head):
        qh = q_all[:, h * hs:(h + 1) * hs]                       # (tq, hs)

        def kv_step(ki, acc):
            s0 = pl.multiple_of(ki * tq, tq)
            kk = k_scr[h, pl.ds(s0, tq), :]                      # (tq, hs)
            vv = v_scr[h, pl.ds(s0, tq), :]
            s = lax.dot_general(qh, kk, (((1,), (1,)), ((), ())),
                                preferred_element_type=jnp.float32)
            p = jnp.maximum(s, 0.0).astype(cdt)                  # fully unmasked
            return acc + jnp.dot(p, vv, preferred_element_type=jnp.float32)

        # strictly-below-diagonal kv tiles: no mask, above-diagonal never runs
        y = lax.fori_loop(0, qi, kv_step, jnp.zeros((tq, hs), jnp.float32))

        # diagonal kv tile: masked_fill(-inf) + relu == where(mask, relu(s), 0)
        kk = k_scr[h, pl.ds(q_start, tq), :]
        vv = v_scr[h, pl.ds(q_start, tq), :]
        s = lax.dot_general(qh, kk, (((1,), (1,)), ((), ())),
                            preferred_element_type=jnp.float32)
        p = jnp.where(diag_mask, jnp.maximum(s, 0.0), 0.0).astype(cdt)
        y = y + jnp.dot(p, vv, preferred_element_type=jnp.float32)

        # fold this head straight into the output projection accumulator
        out = out + jnp.dot(y.astype(cdt), wproj_ref[h],
                            preferred_element_type=jnp.float32)

    # epilogue: add the output bias once, write the lane-dense (tq, C) block
    o_ref[0] = (out + bproj_ref[...]).astype(o_ref.dtype)


def causal_self_attention(x, w_qkv, b_qkv, w_proj, b_proj, *, n_head,
                          q_block=256, compute_dtype=jnp.bfloat16,
                          vmem_limit_bytes=None):
    """x: (B,T,C); w_qkv: (C,3C); b_qkv: (1,3C); w_proj: (C,C); b_proj: (1,C).

    Weight convention is `y = x @ W + b` (i.e. already transposed vs.
    torch.nn.Linear's (out, in) weight).  compute_dtype sets the MXU operand
    dtype (bf16 by default); accumulation is always float32 and the output
    keeps x's dtype.
    """
    B, T, C = x.shape
    assert C % n_head == 0
    hs = C // n_head
    tq = min(q_block, T)
    assert T % tq == 0, "T must be a multiple of the q tile size"
    n_tiles = T // tq
    out_dtype = x.dtype
    cdt = jnp.dtype(compute_dtype) if compute_dtype is not None else x.dtype

    # One-off parameter relayout / casts (outside the kernel).
    wq, wk, wv = jnp.split(w_qkv, 3, axis=1)                  # (C, C) each
    bq, bk, bv = jnp.split(b_qkv.reshape(3 * C), 3)           # (C,) each
    wproj_h = w_proj.reshape(n_head, hs, C)                   # (H, hs, C)

    x_c = x.astype(cdt)
    wq_c, wk_c, wv_c = wq.astype(cdt), wk.astype(cdt), wv.astype(cdt)
    wproj_c = wproj_h.astype(cdt)
    bq_f = bq.reshape(1, C).astype(jnp.float32)
    bk_f = bk.reshape(1, C).astype(jnp.float32)
    bv_f = bv.reshape(1, C).astype(jnp.float32)
    bproj_f = b_proj.reshape(1, C).astype(jnp.float32)

    kernel = functools.partial(
        _attn_kernel, n_head=n_head, head_size=hs,
        scale=1.0 / math.sqrt(hs), compute_dtype=cdt)

    const2 = lambda b, i: (0, 0)
    const3 = lambda b, i: (0, 0, 0)

    return pl.pallas_call(
        kernel,
        out_shape=jax.ShapeDtypeStruct((B, T, C), out_dtype),
        grid_spec=pltpu.PrefetchScalarGridSpec(
            num_scalar_prefetch=0,
            grid=(B, n_tiles),
            in_specs=[
                # x: whole (T, C) slab resident per batch (re-DMA'd only when
                # the batch index changes).
                pl.BlockSpec((1, T, C), lambda b, i: (b, 0, 0)),
                # weights / biases: constant index maps -> fetched once,
                # resident in VMEM for the whole call.
                pl.BlockSpec((C, C), const2),                 # wq
                pl.BlockSpec((C, C), const2),                 # wk
                pl.BlockSpec((C, C), const2),                 # wv
                pl.BlockSpec((1, C), const2),                 # bq (f32)
                pl.BlockSpec((1, C), const2),                 # bk (f32)
                pl.BlockSpec((1, C), const2),                 # bv (f32)
                pl.BlockSpec((n_head, hs, C), const3),        # wproj head-major
                pl.BlockSpec((1, C), const2),                 # bproj (f32)
            ],
            out_specs=pl.BlockSpec((1, tq, C), lambda b, i: (b, i, 0)),
            scratch_shapes=[
                pltpu.VMEM((n_head, T, hs), cdt),   # K cache, per-head layout
                pltpu.VMEM((n_head, T, hs), cdt),   # V cache, per-head layout
            ],
        ),
        compiler_params=pltpu.CompilerParams(
            dimension_semantics=("parallel", "arbitrary"),
            vmem_limit_bytes=vmem_limit_bytes),
    )(x_c, wq_c, wk_c, wv_c, bq_f, bk_f, bv_f, wproj_c, bproj_f)


def _reference(x, w_qkv, b_qkv, w_proj, b_proj, n_head):
    """Pure-JAX reference mirroring the PyTorch forward (eval mode)."""
    B, T, C = x.shape
    hs = C // n_head
    qkv = x @ w_qkv + b_qkv.reshape(3 * C)
    q, k, v = jnp.split(qkv, 3, axis=2)
    q, k, v = jax.nn.relu(q), jax.nn.relu(k), jax.nn.relu(v)
    q = q.reshape(B, T, n_head, hs).transpose(0, 2, 1, 3)
    k = k.reshape(B, T, n_head, hs).transpose(0, 2, 1, 3)
    v = v.reshape(B, T, n_head, hs).transpose(0, 2, 1, 3)
    att = (q @ jnp.swapaxes(k, -2, -1)) * (1.0 / math.sqrt(hs))
    mask = jnp.tril(jnp.ones((T, T)))[None, None]
    att = jnp.where(mask == 0, -jnp.inf, att)
    att = jax.nn.relu(att)
    y = att @ v
    y = y.transpose(0, 2, 1, 3).reshape(B, T, C)
    return y @ w_proj + b_proj.reshape(C)


if __name__ == "__main__":
    # Config implied by the module: n_embd=32, n_head=4, block_size >= T
    B, T, C, n_head = 2, 8, 32, 4
    key = jax.random.PRNGKey(0)
    k1, k2, k3, k4, k5 = jax.random.split(key, 5)

    # PyTorch-Linear-style init: U(-1/sqrt(fan_in), 1/sqrt(fan_in))
    bound = 1.0 / math.sqrt(C)
    w_qkv = jax.random.uniform(k1, (C, 3 * C), jnp.float32, -bound, bound)
    b_qkv = jax.random.uniform(k2, (1, 3 * C), jnp.float32, -bound, bound)
    w_proj = jax.random.uniform(k3, (C, C), jnp.float32, -bound, bound)
    b_proj = jax.random.uniform(k4, (1, C), jnp.float32, -bound, bound)
    x = jax.random.normal(k5, (B, T, C), jnp.float32)

    ref = _reference(x, w_qkv, b_qkv, w_proj, b_proj, n_head)

    # float32 MXU path: must match the f32 reference tightly.
    out_f32 = causal_self_attention(x, w_qkv, b_qkv, w_proj, b_proj,
                                    n_head=n_head, compute_dtype=jnp.float32)
    out_f32 = jax.block_until_ready(out_f32)
    assert out_f32.shape == (B, T, C)
    err32 = float(jnp.max(jnp.abs(out_f32 - ref)))
    assert jnp.allclose(out_f32, ref, atol=1e-4, rtol=1e-4), \
        f"f32 mismatch vs reference (max |err| = {err32})"

    # bf16 MXU path (the performance default): f32 accumulation, loose check.
    out_bf16 = causal_self_attention(x, w_qkv, b_qkv, w_proj, b_proj,
                                     n_head=n_head)
    out_bf16 = jax.block_until_ready(out_bf16)
    assert out_bf16.shape == (B, T, C)
    errbf = float(jnp.max(jnp.abs(out_bf16 - ref)))
    assert jnp.allclose(out_bf16, ref, atol=2e-1, rtol=2e-1), \
        f"bf16 mismatch vs reference (max |err| = {errbf})"

    print("KERNEL_OK")
</pallas_src>

<mosaic_0001>
module attributes {stable_mosaic.version = 11 : i64} {
  func.func @_attn_kernel(%arg0: i32, %arg1: i32, %arg2: memref<1x8x32xf32, #tpu.memory_space<vmem>>, %arg3: memref<32x32xf32, #tpu.memory_space<vmem>>, %arg4: memref<32x32xf32, #tpu.memory_space<vmem>>, %arg5: memref<32x32xf32, #tpu.memory_space<vmem>>, %arg6: memref<1x32xf32, #tpu.memory_space<vmem>>, %arg7: memref<1x32xf32, #tpu.memory_space<vmem>>, %arg8: memref<1x32xf32, #tpu.memory_space<vmem>>, %arg9: memref<4x8x32xf32, #tpu.memory_space<vmem>>, %arg10: memref<1x32xf32, #tpu.memory_space<vmem>>, %arg11: memref<1x8x32xf32, #tpu.memory_space<vmem>>, %arg12: memref<4x8x8xf32, #tpu.memory_space<vmem>>, %arg13: memref<4x8x8xf32, #tpu.memory_space<vmem>>) attributes {dimension_semantics = [#tpu.dimension_semantics<parallel>, #tpu.dimension_semantics<arbitrary>], iteration_bounds = array<i64: 2, 1>, scalar_prefetch = 0 : i64, scratch_operands = 2 : i64, tpu.core_type = #tpu.core_type<tc>, window_params = [{transform_indices = @transform_0, window_bounds = array<i64: 1, 8, 32>}, {pipeline_mode = #tpu.pipeline_mode<synchronous>, transform_indices = @transform_1, window_bounds = array<i64: 32, 32>}, {pipeline_mode = #tpu.pipeline_mode<synchronous>, transform_indices = @transform_2, window_bounds = array<i64: 32, 32>}, {pipeline_mode = #tpu.pipeline_mode<synchronous>, transform_indices = @transform_3, window_bounds = array<i64: 32, 32>}, {pipeline_mode = #tpu.pipeline_mode<synchronous>, transform_indices = @transform_4, window_bounds = array<i64: 1, 32>}, {pipeline_mode = #tpu.pipeline_mode<synchronous>, transform_indices = @transform_5, window_bounds = array<i64: 1, 32>}, {pipeline_mode = #tpu.pipeline_mode<synchronous>, transform_indices = @transform_6, window_bounds = array<i64: 1, 32>}, {pipeline_mode = #tpu.pipeline_mode<synchronous>, transform_indices = @transform_7, window_bounds = array<i64: 4, 8, 32>}, {pipeline_mode = #tpu.pipeline_mode<synchronous>, transform_indices = @transform_8, window_bounds = array<i64: 1, 32>}, {transform_indices = @transform_9, window_bounds = array<i64: 1, 8, 32>}]} {
    %c0_i32 = arith.constant 0 : i32
    %0 = arith.cmpi eq, %arg1, %c0_i32 : i32
    %1 = arith.extui %0 : i1 to i32
    %c0_i32_0 = arith.constant 0 : i32
    %2 = arith.cmpi ne, %1, %c0_i32_0 : i32
    scf.if %2 {
      %c0_70 = arith.constant 0 : index
      %c0_71 = arith.constant 0 : index
      %c0_72 = arith.constant 0 : index
      %115 = vector.load %arg2[%c0_70, %c0_71, %c0_72] : memref<1x8x32xf32, #tpu.memory_space<vmem>>, vector<1x8x32xf32>
      %116 = vector.shape_cast %115 : vector<1x8x32xf32> to vector<8x32xf32>
      %c0_73 = arith.constant 0 : index
      %c0_74 = arith.constant 0 : index
      %117 = vector.load %arg4[%c0_73, %c0_74] : memref<32x32xf32, #tpu.memory_space<vmem>>, vector<32x32xf32>
      %cst_75 = arith.constant dense<0.000000e+00> : vector<8x32xf32>
      %118 = tpu.matmul %116, %117, %cst_75 {dimension_numbers = #tpu.dot_dimension_numbers<[1], [0], [0], [1], [0, 0, 1, 1], [], []>} : vector<8x32xf32>, vector<32x32xf32>, vector<8x32xf32> -> vector<8x32xf32>
      %c0_76 = arith.constant 0 : index
      %c0_77 = arith.constant 0 : index
      %119 = vector.load %arg7[%c0_76, %c0_77] : memref<1x32xf32, #tpu.memory_space<vmem>>, vector<1x32xf32>
      %120 = vector.broadcast %119 : vector<1x32xf32> to vector<8x32xf32>
      %121 = arith.addf %118, %120 : vector<8x32xf32>
      %cst_78 = arith.constant 0.000000e+00 : f32
      %122 = vector.broadcast %cst_78 : f32 to vector<8x32xf32>
      %123 = arith.maximumf %121, %122 : vector<8x32xf32>
      %c0_79 = arith.constant 0 : index
      %c0_80 = arith.constant 0 : index
      %124 = vector.load %arg5[%c0_79, %c0_80] : memref<32x32xf32, #tpu.memory_space<vmem>>, vector<32x32xf32>
      %cst_81 = arith.constant dense<0.000000e+00> : vector<8x32xf32>
      %125 = tpu.matmul %116, %124, %cst_81 {dimension_numbers = #tpu.dot_dimension_numbers<[1], [0], [0], [1], [0, 0, 1, 1], [], []>} : vector<8x32xf32>, vector<32x32xf32>, vector<8x32xf32> -> vector<8x32xf32>
      %c0_82 = arith.constant 0 : index
      %c0_83 = arith.constant 0 : index
      %126 = vector.load %arg8[%c0_82, %c0_83] : memref<1x32xf32, #tpu.memory_space<vmem>>, vector<1x32xf32>
      %127 = vector.broadcast %126 : vector<1x32xf32> to vector<8x32xf32>
      %128 = arith.addf %125, %127 : vector<8x32xf32>
      %cst_84 = arith.constant 0.000000e+00 : f32
      %129 = vector.broadcast %cst_84 : f32 to vector<8x32xf32>
      %130 = arith.maximumf %128, %129 : vector<8x32xf32>
      %131 = vector.extract_strided_slice %123 {offsets = [0, 0], sizes = [8, 8], strides = [1, 1]} : vector<8x32xf32> to vector<8x8xf32>
      %c0_85 = arith.constant 0 : index
      %c0_86 = arith.constant 0 : index
      %c0_87 = arith.constant 0 : index
      %132 = vector.load %arg12[%c0_85, %c0_86, %c0_87] : memref<4x8x8xf32, #tpu.memory_space<vmem>>, vector<1x8x8xf32>
      %133 = vector.shape_cast %132 : vector<1x8x8xf32> to vector<8x8xf32>
      %134 = vector.shape_cast %131 : vector<8x8xf32> to vector<1x8x8xf32>
      tpu.vector_store %arg12[%c0_85, %c0_86, %c0_87], %134 {strides = array<i32>} : memref<4x8x8xf32, #tpu.memory_space<vmem>>, vector<1x8x8xf32>,
      %135 = vector.extract_strided_slice %130 {offsets = [0, 0], sizes = [8, 8], strides = [1, 1]} : vector<8x32xf32> to vector<8x8xf32>
      %c0_88 = arith.constant 0 : index
      %c0_89 = arith.constant 0 : index
      %c0_90 = arith.constant 0 : index
      %136 = vector.load %arg13[%c0_88, %c0_89, %c0_90] : memref<4x8x8xf32, #tpu.memory_space<vmem>>, vector<1x8x8xf32>
      %137 = vector.shape_cast %136 : vector<1x8x8xf32> to vector<8x8xf32>
      %138 = vector.shape_cast %135 : vector<8x8xf32> to vector<1x8x8xf32>
      tpu.vector_store %arg13[%c0_88, %c0_89, %c0_90], %138 {strides = array<i32>} : memref<4x8x8xf32, #tpu.memory_space<vmem>>, vector<1x8x8xf32>,
      %139 = vector.extract_strided_slice %123 {offsets = [0, 8], sizes = [8, 8], strides = [1, 1]} : vector<8x32xf32> to vector<8x8xf32>
      %c1_91 = arith.constant 1 : index
      %c0_92 = arith.constant 0 : index
      %c0_93 = arith.constant 0 : index
      %140 = vector.load %arg12[%c1_91, %c0_92, %c0_93] : memref<4x8x8xf32, #tpu.memory_space<vmem>>, vector<1x8x8xf32>
      %141 = vector.shape_cast %140 : vector<1x8x8xf32> to vector<8x8xf32>
      %142 = vector.shape_cast %139 : vector<8x8xf32> to vector<1x8x8xf32>
      tpu.vector_store %arg12[%c1_91, %c0_92, %c0_93], %142 {strides = array<i32>} : memref<4x8x8xf32, #tpu.memory_space<vmem>>, vector<1x8x8xf32>,
      %143 = vector.extract_strided_slice %130 {offsets = [0, 8], sizes = [8, 8], strides = [1, 1]} : vector<8x32xf32> to vector<8x8xf32>
      %c1_94 = arith.constant 1 : index
      %c0_95 = arith.constant 0 : index
      %c0_96 = arith.constant 0 : index
      %144 = vector.load %arg13[%c1_94, %c0_95, %c0_96] : memref<4x8x8xf32, #tpu.memory_space<vmem>>, vector<1x8x8xf32>
      %145 = vector.shape_cast %144 : vector<1x8x8xf32> to vector<8x8xf32>
      %146 = vector.shape_cast %143 : vector<8x8xf32> to vector<1x8x8xf32>
      tpu.vector_store %arg13[%c1_94, %c0_95, %c0_96], %146 {strides = array<i32>} : memref<4x8x8xf32, #tpu.memory_space<vmem>>, vector<1x8x8xf32>,
      %147 = vector.extract_strided_slice %123 {offsets = [0, 16], sizes = [8, 8], strides = [1, 1]} : vector<8x32xf32> to vector<8x8xf32>
      %c2_97 = arith.constant 2 : index
      %c0_98 = arith.constant 0 : index
      %c0_99 = arith.constant 0 : index
      %148 = vector.load %arg12[%c2_97, %c0_98, %c0_99] : memref<4x8x8xf32, #tpu.memory_space<vmem>>, vector<1x8x8xf32>
      %149 = vector.shape_cast %148 : vector<1x8x8xf32> to vector<8x8xf32>
      %150 = vector.shape_cast %147 : vector<8x8xf32> to vector<1x8x8xf32>
      tpu.vector_store %arg12[%c2_97, %c0_98, %c0_99], %150 {strides = array<i32>} : memref<4x8x8xf32, #tpu.memory_space<vmem>>, vector<1x8x8xf32>,
      %151 = vector.extract_strided_slice %130 {offsets = [0, 16], sizes = [8, 8], strides = [1, 1]} : vector<8x32xf32> to vector<8x8xf32>
      %c2_100 = arith.constant 2 : index
      %c0_101 = arith.constant 0 : index
      %c0_102 = arith.constant 0 : index
      %152 = vector.load %arg13[%c2_100, %c0_101, %c0_102] : memref<4x8x8xf32, #tpu.memory_space<vmem>>, vector<1x8x8xf32>
      %153 = vector.shape_cast %152 : vector<1x8x8xf32> to vector<8x8xf32>
      %154 = vector.shape_cast %151 : vector<8x8xf32> to vector<1x8x8xf32>
      tpu.vector_store %arg13[%c2_100, %c0_101, %c0_102], %154 {strides = array<i32>} : memref<4x8x8xf32, #tpu.memory_space<vmem>>, vector<1x8x8xf32>,
      %155 = vector.extract_strided_slice %123 {offsets = [0, 24], sizes = [8, 8], strides = [1, 1]} : vector<8x32xf32> to vector<8x8xf32>
      %c3_103 = arith.constant 3 : index
      %c0_104 = arith.constant 0 : index
      %c0_105 = arith.constant 0 : index
      %156 = vector.load %arg12[%c3_103, %c0_104, %c0_105] : memref<4x8x8xf32, #tpu.memory_space<vmem>>, vector<1x8x8xf32>
      %157 = vector.shape_cast %156 : vector<1x8x8xf32> to vector<8x8xf32>
      %158 = vector.shape_cast %155 : vector<8x8xf32> to vector<1x8x8xf32>
      tpu.vector_store %arg12[%c3_103, %c0_104, %c0_105], %158 {strides = array<i32>} : memref<4x8x8xf32, #tpu.memory_space<vmem>>, vector<1x8x8xf32>,
      %159 = vector.extract_strided_slice %130 {offsets = [0, 24], sizes = [8, 8], strides = [1, 1]} : vector<8x32xf32> to vector<8x8xf32>
      %c3_106 = arith.constant 3 : index
      %c0_107 = arith.constant 0 : index
      %c0_108 = arith.constant 0 : index
      %160 = vector.load %arg13[%c3_106, %c0_107, %c0_108] : memref<4x8x8xf32, #tpu.memory_space<vmem>>, vector<1x8x8xf32>
      %161 = vector.shape_cast %160 : vector<1x8x8xf32> to vector<8x8xf32>
      %162 = vector.shape_cast %159 : vector<8x8xf32> to vector<1x8x8xf32>
      tpu.vector_store %arg13[%c3_106, %c0_107, %c0_108], %162 {strides = array<i32>} : memref<4x8x8xf32, #tpu.memory_space<vmem>>, vector<1x8x8xf32>,
    } else {
    }
    %c8_i32 = arith.constant 8 : i32
    %3 = arith.muli %arg1, %c8_i32 : i32
    %4 = tpu.assume_multiple %3, 8 : i32
    %c0 = arith.constant 0 : index
    %5 = arith.index_cast %4 : i32 to index
    %c0_1 = arith.constant 0 : index
    %6 = vector.load %arg2[%c0, %5, %c0_1] : memref<1x8x32xf32, #tpu.memory_space<vmem>>, vector<1x8x32xf32>
    %7 = vector.shape_cast %6 : vector<1x8x32xf32> to vector<8x32xf32>
    %c0_2 = arith.constant 0 : index
    %c0_3 = arith.constant 0 : index
    %8 = vector.load %arg3[%c0_2, %c0_3] : memref<32x32xf32, #tpu.memory_space<vmem>>, vector<32x32xf32>
    %cst = arith.constant dense<0.000000e+00> : vector<8x32xf32>
    %9 = tpu.matmul %7, %8, %cst {dimension_numbers = #tpu.dot_dimension_numbers<[1], [0], [0], [1], [0, 0, 1, 1], [], []>} : vector<8x32xf32>, vector<32x32xf32>, vector<8x32xf32> -> vector<8x32xf32>
    %c0_4 = arith.constant 0 : index
    %c0_5 = arith.constant 0 : index
    %10 = vector.load %arg6[%c0_4, %c0_5] : memref<1x32xf32, #tpu.memory_space<vmem>>, vector<1x32xf32>
    %11 = vector.broadcast %10 : vector<1x32xf32> to vector<8x32xf32>
    %12 = arith.addf %9, %11 : vector<8x32xf32>
    %cst_6 = arith.constant 0.000000e+00 : f32
    %13 = vector.broadcast %cst_6 : f32 to vector<8x32xf32>
    %14 = arith.maximumf %12, %13 : vector<8x32xf32>
    %cst_7 = arith.constant 0.353553385 : f32
    %15 = vector.broadcast %cst_7 : f32 to vector<8x32xf32>
    %16 = arith.mulf %14, %15 : vector<8x32xf32>
    %17 = tpu.iota {dimensions = array<i32: 0>} : vector<8x8xi32>
    %18 = tpu.iota {dimensions = array<i32: 1>} : vector<8x8xi32>
    %19 = arith.cmpi sle, %18, %17 : vector<8x8xi32>
    %cst_8 = arith.constant 0.000000e+00 : f32
    %20 = vector.broadcast %cst_8 : f32 to vector<8x32xf32>
    %21 = vector.extract_strided_slice %16 {offsets = [0, 0], sizes = [8, 8], strides = [1, 1]} : vector<8x32xf32> to vector<8x8xf32>
    %cst_9 = arith.constant 0.000000e+00 : f32
    %22 = vector.broadcast %cst_9 : f32 to vector<8x8xf32>
    %c0_i32_10 = arith.constant 0 : i32
    %23 = arith.subi %arg1, %c0_i32_10 : i32
    %24 = arith.addi %c0_i32_10, %23 : i32
    %c1_i32 = arith.constant 1 : i32
    %25 = scf.for %arg14 = %c0_i32_10 to %24 step %c1_i32 iter_args(%arg15 = %22) -> (vector<8x8xf32>)  : i32 {
      %c8_i32_70 = arith.constant 8 : i32
      %115 = arith.muli %arg14, %c8_i32_70 : i32
      %116 = tpu.assume_multiple %115, 8 : i32
      %c0_71 = arith.constant 0 : index
      %117 = arith.index_cast %116 : i32 to index
      %c0_72 = arith.constant 0 : index
      %118 = vector.load %arg12[%c0_71, %117, %c0_72] : memref<4x8x8xf32, #tpu.memory_space<vmem>>, vector<1x8x8xf32>
      %119 = vector.shape_cast %118 : vector<1x8x8xf32> to vector<8x8xf32>
      %c0_73 = arith.constant 0 : index
      %120 = arith.index_cast %116 : i32 to index
      %c0_74 = arith.constant 0 : index
      %121 = vector.load %arg13[%c0_73, %120, %c0_74] : memref<4x8x8xf32, #tpu.memory_space<vmem>>, vector<1x8x8xf32>
      %122 = vector.shape_cast %121 : vector<1x8x8xf32> to vector<8x8xf32>
      %cst_75 = arith.constant dense<0.000000e+00> : vector<8x8xf32>
      %123 = tpu.matmul %21, %119, %cst_75 {dimension_numbers = #tpu.dot_dimension_numbers<[1], [1], [0], [0], [0, 0, 1, 0], [], []>} : vector<8x8xf32>, vector<8x8xf32>, vector<8x8xf32> -> vector<8x8xf32>
      %cst_76 = arith.constant 0.000000e+00 : f32
      %124 = vector.broadcast %cst_76 : f32 to vector<8x8xf32>
      %125 = arith.maximumf %123, %124 : vector<8x8xf32>
      %cst_77 = arith.constant dense<0.000000e+00> : vector<8x8xf32>
      %126 = tpu.matmul %125, %122, %cst_77 {dimension_numbers = #tpu.dot_dimension_numbers<[1], [0], [0], [1], [0, 0, 1, 1], [], []>} : vector<8x8xf32>, vector<8x8xf32>, vector<8x8xf32> -> vector<8x8xf32>
      %127 = arith.addf %arg15, %126 : vector<8x8xf32>
      scf.yield %127 : vector<8x8xf32>
    }
    %c0_11 = arith.constant 0 : index
    %26 = arith.index_cast %4 : i32 to index
    %c0_12 = arith.constant 0 : index
    %27 = vector.load %arg12[%c0_11, %26, %c0_12] : memref<4x8x8xf32, #tpu.memory_space<vmem>>, vector<1x8x8xf32>
    %28 = vector.shape_cast %27 : vector<1x8x8xf32> to vector<8x8xf32>
    %c0_13 = arith.constant 0 : index
    %29 = arith.index_cast %4 : i32 to index
    %c0_14 = arith.constant 0 : index
    %30 = vector.load %arg13[%c0_13, %29, %c0_14] : memref<4x8x8xf32, #tpu.memory_space<vmem>>, vector<1x8x8xf32>
    %31 = vector.shape_cast %30 : vector<1x8x8xf32> to vector<8x8xf32>
    %cst_15 = arith.constant dense<0.000000e+00> : vector<8x8xf32>
    %32 = tpu.matmul %21, %28, %cst_15 {dimension_numbers = #tpu.dot_dimension_numbers<[1], [1], [0], [0], [0, 0, 1, 0], [], []>} : vector<8x8xf32>, vector<8x8xf32>, vector<8x8xf32> -> vector<8x8xf32>
    %cst_16 = arith.constant 0.000000e+00 : f32
    %33 = vector.broadcast %cst_16 : f32 to vector<8x8xf32>
    %34 = arith.maximumf %32, %33 : vector<8x8xf32>
    %cst_17 = arith.constant 0.000000e+00 : f32
    %35 = vector.broadcast %cst_17 : f32 to vector<8x8xf32>
    %36 = arith.select %19, %34, %35 : vector<8x8xi1>, vector<8x8xf32>
    %cst_18 = arith.constant dense<0.000000e+00> : vector<8x8xf32>
    %37 = tpu.matmul %36, %31, %cst_18 {dimension_numbers = #tpu.dot_dimension_numbers<[1], [0], [0], [1], [0, 0, 1, 1], [], []>} : vector<8x8xf32>, vector<8x8xf32>, vector<8x8xf32> -> vector<8x8xf32>
    %38 = arith.addf %25, %37 : vector<8x8xf32>
    %c0_19 = arith.constant 0 : index
    %c0_20 = arith.constant 0 : index
    %c0_21 = arith.constant 0 : index
    %39 = vector.load %arg9[%c0_19, %c0_20, %c0_21] : memref<4x8x32xf32, #tpu.memory_space<vmem>>, vector<1x8x32xf32>
    %40 = vector.shape_cast %39 : vector<1x8x32xf32> to vector<8x32xf32>
    %cst_22 = arith.constant dense<0.000000e+00> : vector<8x32xf32>
    %41 = tpu.matmul %38, %40, %cst_22 {dimension_numbers = #tpu.dot_dimension_numbers<[1], [0], [0], [1], [0, 0, 1, 1], [], []>} : vector<8x8xf32>, vector<8x32xf32>, vector<8x32xf32> -> vector<8x32xf32>
    %42 = arith.addf %20, %41 : vector<8x32xf32>
    %43 = vector.extract_strided_slice %16 {offsets = [0, 8], sizes = [8, 8], strides = [1, 1]} : vector<8x32xf32> to vector<8x8xf32>
    %cst_23 = arith.constant 0.000000e+00 : f32
    %44 = vector.broadcast %cst_23 : f32 to vector<8x8xf32>
    %c0_i32_24 = arith.constant 0 : i32
    %45 = arith.subi %arg1, %c0_i32_24 : i32
    %46 = arith.addi %c0_i32_24, %45 : i32
    %c1_i32_25 = arith.constant 1 : i32
    %47 = scf.for %arg14 = %c0_i32_24 to %46 step %c1_i32_25 iter_args(%arg15 = %44) -> (vector<8x8xf32>)  : i32 {
      %c8_i32_70 = arith.constant 8 : i32
      %115 = arith.muli %arg14, %c8_i32_70 : i32
      %116 = tpu.assume_multiple %115, 8 : i32
      %c1_71 = arith.constant 1 : index
      %117 = arith.index_cast %116 : i32 to index
      %c0_72 = arith.constant 0 : index
      %118 = vector.load %arg12[%c1_71, %117, %c0_72] : memref<4x8x8xf32, #tpu.memory_space<vmem>>, vector<1x8x8xf32>
      %119 = vector.shape_cast %118 : vector<1x8x8xf32> to vector<8x8xf32>
      %c1_73 = arith.constant 1 : index
      %120 = arith.index_cast %116 : i32 to index
      %c0_74 = arith.constant 0 : index
      %121 = vector.load %arg13[%c1_73, %120, %c0_74] : memref<4x8x8xf32, #tpu.memory_space<vmem>>, vector<1x8x8xf32>
      %122 = vector.shape_cast %121 : vector<1x8x8xf32> to vector<8x8xf32>
      %cst_75 = arith.constant dense<0.000000e+00> : vector<8x8xf32>
      %123 = tpu.matmul %43, %119, %cst_75 {dimension_numbers = #tpu.dot_dimension_numbers<[1], [1], [0], [0], [0, 0, 1, 0], [], []>} : vector<8x8xf32>, vector<8x8xf32>, vector<8x8xf32> -> vector<8x8xf32>
      %cst_76 = arith.constant 0.000000e+00 : f32
      %124 = vector.broadcast %cst_76 : f32 to vector<8x8xf32>
      %125 = arith.maximumf %123, %124 : vector<8x8xf32>
      %cst_77 = arith.constant dense<0.000000e+00> : vector<8x8xf32>
      %126 = tpu.matmul %125, %122, %cst_77 {dimension_numbers = #tpu.dot_dimension_numbers<[1], [0], [0], [1], [0, 0, 1, 1], [], []>} : vector<8x8xf32>, vector<8x8xf32>, vector<8x8xf32> -> vector<8x8xf32>
      %127 = arith.addf %arg15, %126 : vector<8x8xf32>
      scf.yield %127 : vector<8x8xf32>
    }
    %c1 = arith.constant 1 : index
    %48 = arith.index_cast %4 : i32 to index
    %c0_26 = arith.constant 0 : index
    %49 = vector.load %arg12[%c1, %48, %c0_26] : memref<4x8x8xf32, #tpu.memory_space<vmem>>, vector<1x8x8xf32>
    %50 = vector.shape_cast %49 : vector<1x8x8xf32> to vector<8x8xf32>
    %c1_27 = arith.constant 1 : index
    %51 = arith.index_cast %4 : i32 to index
    %c0_28 = arith.constant 0 : index
    %52 = vector.load %arg13[%c1_27, %51, %c0_28] : memref<4x8x8xf32, #tpu.memory_space<vmem>>, vector<1x8x8xf32>
    %53 = vector.shape_cast %52 : vector<1x8x8xf32> to vector<8x8xf32>
    %cst_29 = arith.constant dense<0.000000e+00> : vector<8x8xf32>
    %54 = tpu.matmul %43, %50, %cst_29 {dimension_numbers = #tpu.dot_dimension_numbers<[1], [1], [0], [0], [0, 0, 1, 0], [], []>} : vector<8x8xf32>, vector<8x8xf32>, vector<8x8xf32> -> vector<8x8xf32>
    %cst_30 = arith.constant 0.000000e+00 : f32
    %55 = vector.broadcast %cst_30 : f32 to vector<8x8xf32>
    %56 = arith.maximumf %54, %55 : vector<8x8xf32>
    %cst_31 = arith.constant 0.000000e+00 : f32
    %57 = vector.broadcast %cst_31 : f32 to vector<8x8xf32>
    %58 = arith.select %19, %56, %57 : vector<8x8xi1>, vector<8x8xf32>
    %cst_32 = arith.constant dense<0.000000e+00> : vector<8x8xf32>
    %59 = tpu.matmul %58, %53, %cst_32 {dimension_numbers = #tpu.dot_dimension_numbers<[1], [0], [0], [1], [0, 0, 1, 1], [], []>} : vector<8x8xf32>, vector<8x8xf32>, vector<8x8xf32> -> vector<8x8xf32>
    %60 = arith.addf %47, %59 : vector<8x8xf32>
    %c1_33 = arith.constant 1 : index
    %c0_34 = arith.constant 0 : index
    %c0_35 = arith.constant 0 : index
    %61 = vector.load %arg9[%c1_33, %c0_34, %c0_35] : memref<4x8x32xf32, #tpu.memory_space<vmem>>, vector<1x8x32xf32>
    %62 = vector.shape_cast %61 : vector<1x8x32xf32> to vector<8x32xf32>
    %cst_36 = arith.constant dense<0.000000e+00> : vector<8x32xf32>
    %63 = tpu.matmul %60, %62, %cst_36 {dimension_numbers = #tpu.dot_dimension_numbers<[1], [0], [0], [1], [0, 0, 1, 1], [], []>} : vector<8x8xf32>, vector<8x32xf32>, vector<8x32xf32> -> vector<8x32xf32>
    %64 = arith.addf %42, %63 : vector<8x32xf32>
    %65 = vector.extract_strided_slice %16 {offsets = [0, 16], sizes = [8, 8], strides = [1, 1]} : vector<8x32xf32> to vector<8x8xf32>
    %cst_37 = arith.constant 0.000000e+00 : f32
    %66 = vector.broadcast %cst_37 : f32 to vector<8x8xf32>
    %c0_i32_38 = arith.constant 0 : i32
    %67 = arith.subi %arg1, %c0_i32_38 : i32
    %68 = arith.addi %c0_i32_38, %67 : i32
    %c1_i32_39 = arith.constant 1 : i32
    %69 = scf.for %arg14 = %c0_i32_38 to %68 step %c1_i32_39 iter_args(%arg15 = %66) -> (vector<8x8xf32>)  : i32 {
      %c8_i32_70 = arith.constant 8 : i32
      %115 = arith.muli %arg14, %c8_i32_70 : i32
      %116 = tpu.assume_multiple %115, 8 : i32
      %c2_71 = arith.constant 2 : index
      %117 = arith.index_cast %116 : i32 to index
      %c0_72 = arith.constant 0 : index
      %118 = vector.load %arg12[%c2_71, %117, %c0_72] : memref<4x8x8xf32, #tpu.memory_space<vmem>>, vector<1x8x8xf32>
      %119 = vector.shape_cast %118 : vector<1x8x8xf32> to vector<8x8xf32>
      %c2_73 = arith.constant 2 : index
      %120 = arith.index_cast %116 : i32 to index
      %c0_74 = arith.constant 0 : index
      %121 = vector.load %arg13[%c2_73, %120, %c0_74] : memref<4x8x8xf32, #tpu.memory_space<vmem>>, vector<1x8x8xf32>
      %122 = vector.shape_cast %121 : vector<1x8x8xf32> to vector<8x8xf32>
      %cst_75 = arith.constant dense<0.000000e+00> : vector<8x8xf32>
      %123 = tpu.matmul %65, %119, %cst_75 {dimension_numbers = #tpu.dot_dimension_numbers<[1], [1], [0], [0], [0, 0, 1, 0], [], []>} : vector<8x8xf32>, vector<8x8xf32>, vector<8x8xf32> -> vector<8x8xf32>
      %cst_76 = arith.constant 0.000000e+00 : f32
      %124 = vector.broadcast %cst_76 : f32 to vector<8x8xf32>
      %125 = arith.maximumf %123, %124 : vector<8x8xf32>
      %cst_77 = arith.constant dense<0.000000e+00> : vector<8x8xf32>
      %126 = tpu.matmul %125, %122, %cst_77 {dimension_numbers = #tpu.dot_dimension_numbers<[1], [0], [0], [1], [0, 0, 1, 1], [], []>} : vector<8x8xf32>, vector<8x8xf32>, vector<8x8xf32> -> vector<8x8xf32>
      %127 = arith.addf %arg15, %126 : vector<8x8xf32>
      scf.yield %127 : vector<8x8xf32>
    }
    %c2 = arith.constant 2 : index
    %70 = arith.index_cast %4 : i32 to index
    %c0_40 = arith.constant 0 : index
    %71 = vector.load %arg12[%c2, %70, %c0_40] : memref<4x8x8xf32, #tpu.memory_space<vmem>>, vector<1x8x8xf32>
    %72 = vector.shape_cast %71 : vector<1x8x8xf32> to vector<8x8xf32>
    %c2_41 = arith.constant 2 : index
    %73 = arith.index_cast %4 : i32 to index
    %c0_42 = arith.constant 0 : index
    %74 = vector.load %arg13[%c2_41, %73, %c0_42] : memref<4x8x8xf32, #tpu.memory_space<vmem>>, vector<1x8x8xf32>
    %75 = vector.shape_cast %74 : vector<1x8x8xf32> to vector<8x8xf32>
    %cst_43 = arith.constant dense<0.000000e+00> : vector<8x8xf32>
    %76 = tpu.matmul %65, %72, %cst_43 {dimension_numbers = #tpu.dot_dimension_numbers<[1], [1], [0], [0], [0, 0, 1, 0], [], []>} : vector<8x8xf32>, vector<8x8xf32>, vector<8x8xf32> -> vector<8x8xf32>
    %cst_44 = arith.constant 0.000000e+00 : f32
    %77 = vector.broadcast %cst_44 : f32 to vector<8x8xf32>
    %78 = arith.maximumf %76, %77 : vector<8x8xf32>
    %cst_45 = arith.constant 0.000000e+00 : f32
    %79 = vector.broadcast %cst_45 : f32 to vector<8x8xf32>
    %80 = arith.select %19, %78, %79 : vector<8x8xi1>, vector<8x8xf32>
    %cst_46 = arith.constant dense<0.000000e+00> : vector<8x8xf32>
    %81 = tpu.matmul %80, %75, %cst_46 {dimension_numbers = #tpu.dot_dimension_numbers<[1], [0], [0], [1], [0, 0, 1, 1], [], []>} : vector<8x8xf32>, vector<8x8xf32>, vector<8x8xf32> -> vector<8x8xf32>
    %82 = arith.addf %69, %81 : vector<8x8xf32>
    %c2_47 = arith.constant 2 : index
    %c0_48 = arith.constant 0 : index
    %c0_49 = arith.constant 0 : index
    %83 = vector.load %arg9[%c2_47, %c0_48, %c0_49] : memref<4x8x32xf32, #tpu.memory_space<vmem>>, vector<1x8x32xf32>
    %84 = vector.shape_cast %83 : vector<1x8x32xf32> to vector<8x32xf32>
    %cst_50 = arith.constant dense<0.000000e+00> : vector<8x32xf32>
    %85 = tpu.matmul %82, %84, %cst_50 {dimension_numbers = #tpu.dot_dimension_numbers<[1], [0], [0], [1], [0, 0, 1, 1], [], []>} : vector<8x8xf32>, vector<8x32xf32>, vector<8x32xf32> -> vector<8x32xf32>
    %86 = arith.addf %64, %85 : vector<8x32xf32>
    %87 = vector.extract_strided_slice %16 {offsets = [0, 24], sizes = [8, 8], strides = [1, 1]} : vector<8x32xf32> to vector<8x8xf32>
    %cst_51 = arith.constant 0.000000e+00 : f32
    %88 = vector.broadcast %cst_51 : f32 to vector<8x8xf32>
    %c0_i32_52 = arith.constant 0 : i32
    %89 = arith.subi %arg1, %c0_i32_52 : i32
    %90 = arith.addi %c0_i32_52, %89 : i32
    %c1_i32_53 = arith.constant 1 : i32
    %91 = scf.for %arg14 = %c0_i32_52 to %90 step %c1_i32_53 iter_args(%arg15 = %88) -> (vector<8x8xf32>)  : i32 {
      %c8_i32_70 = arith.constant 8 : i32
      %115 = arith.muli %arg14, %c8_i32_70 : i32
      %116 = tpu.assume_multiple %115, 8 : i32
      %c3_71 = arith.constant 3 : index
      %117 = arith.index_cast %116 : i32 to index
      %c0_72 = arith.constant 0 : index
      %118 = vector.load %arg12[%c3_71, %117, %c0_72] : memref<4x8x8xf32, #tpu.memory_space<vmem>>, vector<1x8x8xf32>
      %119 = vector.shape_cast %118 : vector<1x8x8xf32> to vector<8x8xf32>
      %c3_73 = arith.constant 3 : index
      %120 = arith.index_cast %116 : i32 to index
      %c0_74 = arith.constant 0 : index
      %121 = vector.load %arg13[%c3_73, %120, %c0_74] : memref<4x8x8xf32, #tpu.memory_space<vmem>>, vector<1x8x8xf32>
      %122 = vector.shape_cast %121 : vector<1x8x8xf32> to vector<8x8xf32>
      %cst_75 = arith.constant dense<0.000000e+00> : vector<8x8xf32>
      %123 = tpu.matmul %87, %119, %cst_75 {dimension_numbers = #tpu.dot_dimension_numbers<[1], [1], [0], [0], [0, 0, 1, 0], [], []>} : vector<8x8xf32>, vector<8x8xf32>, vector<8x8xf32> -> vector<8x8xf32>
      %cst_76 = arith.constant 0.000000e+00 : f32
      %124 = vector.broadcast %cst_76 : f32 to vector<8x8xf32>
      %125 = arith.maximumf %123, %124 : vector<8x8xf32>
      %cst_77 = arith.constant dense<0.000000e+00> : vector<8x8xf32>
      %126 = tpu.matmul %125, %122, %cst_77 {dimension_numbers = #tpu.dot_dimension_numbers<[1], [0], [0], [1], [0, 0, 1, 1], [], []>} : vector<8x8xf32>, vector<8x8xf32>, vector<8x8xf32> -> vector<8x8xf32>
      %127 = arith.addf %arg15, %126 : vector<8x8xf32>
      scf.yield %127 : vector<8x8xf32>
    }
    %c3 = arith.constant 3 : index
    %92 = arith.index_cast %4 : i32 to index
    %c0_54 = arith.constant 0 : index
    %93 = vector.load %arg12[%c3, %92, %c0_54] : memref<4x8x8xf32, #tpu.memory_space<vmem>>, vector<1x8x8xf32>
    %94 = vector.shape_cast %93 : vector<1x8x8xf32> to vector<8x8xf32>
    %c3_55 = arith.constant 3 : index
    %95 = arith.index_cast %4 : i32 to index
    %c0_56 = arith.constant 0 : index
    %96 = vector.load %arg13[%c3_55, %95, %c0_56] : memref<4x8x8xf32, #tpu.memory_space<vmem>>, vector<1x8x8xf32>
    %97 = vector.shape_cast %96 : vector<1x8x8xf32> to vector<8x8xf32>
    %cst_57 = arith.constant dense<0.000000e+00> : vector<8x8xf32>
    %98 = tpu.matmul %87, %94, %cst_57 {dimension_numbers = #tpu.dot_dimension_numbers<[1], [1], [0], [0], [0, 0, 1, 0], [], []>} : vector<8x8xf32>, vector<8x8xf32>, vector<8x8xf32> -> vector<8x8xf32>
    %cst_58 = arith.constant 0.000000e+00 : f32
    %99 = vector.broadcast %cst_58 : f32 to vector<8x8xf32>
    %100 = arith.maximumf %98, %99 : vector<8x8xf32>
    %cst_59 = arith.constant 0.000000e+00 : f32
    %101 = vector.broadcast %cst_59 : f32 to vector<8x8xf32>
    %102 = arith.select %19, %100, %101 : vector<8x8xi1>, vector<8x8xf32>
    %cst_60 = arith.constant dense<0.000000e+00> : vector<8x8xf32>
    %103 = tpu.matmul %102, %97, %cst_60 {dimension_numbers = #tpu.dot_dimension_numbers<[1], [0], [0], [1], [0, 0, 1, 1], [], []>} : vector<8x8xf32>, vector<8x8xf32>, vector<8x8xf32> -> vector<8x8xf32>
    %104 = arith.addf %91, %103 : vector<8x8xf32>
    %c3_61 = arith.constant 3 : index
    %c0_62 = arith.constant 0 : index
    %c0_63 = arith.constant 0 : index
    %105 = vector.load %arg9[%c3_61, %c0_62, %c0_63] : memref<4x8x32xf32, #tpu.memory_space<vmem>>, vector<1x8x32xf32>
    %106 = vector.shape_cast %105 : vector<1x8x32xf32> to vector<8x32xf32>
    %cst_64 = arith.constant dense<0.000000e+00> : vector<8x32xf32>
    %107 = tpu.matmul %104, %106, %cst_64 {dimension_numbers = #tpu.dot_dimension_numbers<[1], [0], [0], [1], [0, 0, 1, 1], [], []>} : vector<8x8xf32>, vector<8x32xf32>, vector<8x32xf32> -> vector<8x32xf32>
    %108 = arith.addf %86, %107 : vector<8x32xf32>
    %c0_65 = arith.constant 0 : index
    %c0_66 = arith.constant 0 : index
    %109 = vector.load %arg10[%c0_65, %c0_66] : memref<1x32xf32, #tpu.memory_space<vmem>>, vector<1x32xf32>
    %110 = vector.broadcast %109 : vector<1x32xf32> to vector<8x32xf32>
    %111 = arith.addf %108, %110 : vector<8x32xf32>
    %c0_67 = arith.constant 0 : index
    %c0_68 = arith.constant 0 : index
    %c0_69 = arith.constant 0 : index
    %112 = vector.load %arg11[%c0_67, %c0_68, %c0_69] : memref<1x8x32xf32, #tpu.memory_space<vmem>>, vector<1x8x32xf32>
    %113 = vector.shape_cast %112 : vector<1x8x32xf32> to vector<8x32xf32>
    %114 = vector.shape_cast %111 : vector<8x32xf32> to vector<1x8x32xf32>
    tpu.vector_store %arg11[%c0_67, %c0_68, %c0_69], %114 {strides = array<i32>} : memref<1x8x32xf32, #tpu.memory_space<vmem>>, vector<1x8x32xf32>,
    return
  }
  func.func @transform_0(%arg0: i32, %arg1: i32) -> (i32, i32, i32) {
    %c0_i32 = arith.constant 0 : i32
    %c0_i32_0 = arith.constant 0 : i32
    %c0_i32_1 = arith.constant 0 : i32
    return %arg0, %c0_i32, %c0_i32_0 : i32, i32, i32
  }
  func.func @transform_1(%arg0: i32, %arg1: i32) -> (i32, i32) {
    %c0_i32 = arith.constant 0 : i32
    %c0_i32_0 = arith.constant 0 : i32
    %c0_i32_1 = arith.constant 0 : i32
    return %c0_i32, %c0_i32_0 : i32, i32
  }
  func.func @transform_2(%arg0: i32, %arg1: i32) -> (i32, i32) {
    %c0_i32 = arith.constant 0 : i32
    %c0_i32_0 = arith.constant 0 : i32
    %c0_i32_1 = arith.constant 0 : i32
    return %c0_i32, %c0_i32_0 : i32, i32
  }
  func.func @transform_3(%arg0: i32, %arg1: i32) -> (i32, i32) {
    %c0_i32 = arith.constant 0 : i32
    %c0_i32_0 = arith.constant 0 : i32
    %c0_i32_1 = arith.constant 0 : i32
    return %c0_i32, %c0_i32_0 : i32, i32
  }
  func.func @transform_4(%arg0: i32, %arg1: i32) -> (i32, i32) {
    %c0_i32 = arith.constant 0 : i32
    %c0_i32_0 = arith.constant 0 : i32
    %c0_i32_1 = arith.constant 0 : i32
    return %c0_i32, %c0_i32_0 : i32, i32
  }
  func.func @transform_5(%arg0: i32, %arg1: i32) -> (i32, i32) {
    %c0_i32 = arith.constant 0 : i32
    %c0_i32_0 = arith.constant 0 : i32
    %c0_i32_1 = arith.constant 0 : i32
    return %c0_i32, %c0_i32_0 : i32, i32
  }
  func.func @transform_6(%arg0: i32, %arg1: i32) -> (i32, i32) {
    %c0_i32 = arith.constant 0 : i32
    %c0_i32_0 = arith.constant 0 : i32
    %c0_i32_1 = arith.constant 0 : i32
    return %c0_i32, %c0_i32_0 : i32, i32
  }
  func.func @transform_7(%arg0: i32, %arg1: i32) -> (i32, i32, i32) {
    %c0_i32 = arith.constant 0 : i32
    %c0_i32_0 = arith.constant 0 : i32
    %c0_i32_1 = arith.constant 0 : i32
    %c0_i32_2 = arith.constant 0 : i32
    return %c0_i32, %c0_i32_0, %c0_i32_1 : i32, i32, i32
  }
  func.func @transform_8(%arg0: i32, %arg1: i32) -> (i32, i32) {
    %c0_i32 = arith.constant 0 : i32
    %c0_i32_0 = arith.constant 0 : i32
    %c0_i32_1 = arith.constant 0 : i32
    return %c0_i32, %c0_i32_0 : i32, i32
  }
  func.func @transform_9(%arg0: i32, %arg1: i32) -> (i32, i32, i32) {
    %c0_i32 = arith.constant 0 : i32
    %c0_i32_0 = arith.constant 0 : i32
    return %arg0, %arg1, %c0_i32 : i32, i32, i32
  }
}

</mosaic_0001>

<bundles_post_ra>
// kernel: tpu_custom_call.1
= control target key start
LH: loop header
LB: loop body
LE: loop exit
PB: predicated region body
PF: predicated region fallthrough
CT: control target
= control target key end

     0   :  { %s3581_s0 = inlined_call_operand.hbm [shape: f32[2,8,32], index: 0, kind: input, shape index: {}]   ;;  %s3582_s1 = inlined_call_operand.hbm [shape: f32[32,32], index: 1, kind: input, shape index: {}]   ;;  %s3583_s2 = inlined_call_operand.hbm [shape: f32[32,32], index: 2, kind: input, shape index: {}]   ;;  %s3584_s3 = inlined_call_operand.hbm [shape: f32[32,32], index: 3, kind: input, shape index: {}]   ;;  %s3585_s4 = inlined_call_operand.vmem [shape: f32[1,32], index: 4, kind: input, shape index: {}]   ;;  %s3586_s5 = inlined_call_operand.vmem [shape: f32[1,32], index: 5, kind: input, shape index: {}]   ;;  %s3587_s6 = inlined_call_operand.vmem [shape: f32[1,32], index: 6, kind: input, shape index: {}]   ;;  %s3588_s7 = inlined_call_operand.hbm [shape: f32[4,8,32], index: 7, kind: input, shape index: {}]   ;;  %s3589_s8 = inlined_call_operand.vmem [shape: f32[1,32], index: 8, kind: input, shape index: {}]   ;;  %s3590_s9 = inlined_call_operand.hbm [shape: f32[2,8,32], index: 9, kind: output, shape index: {}]  }
   0x1   :  { %3597 = sst [smem:[#allocation19_spill]] %s3582_s1 }
   0x2   :  { %3598 = sst [smem:[#allocation20_spill]] %s3589_s8 }
   0x3   :  { %3599 = sst [smem:[#allocation21_spill]] %s3590_s9 }
   0x4   :  { %14 = vsyncpa [#allocation5], 0 }
   0x5   :  { %16 = vsyncpa [#allocation5 + $0x1], 0 }
   0x6   :  { %17 = vsyncpa [#allocation8], 0 }
   0x7   :  { %18 = vsyncpa [#allocation11], 0 }
   0x8   :  { %19 = vsyncpa [#allocation6], 0 }
   0x9   :  { %21 = vsyncpa [#allocation6 + $0x1], 0  ;;  %s3167_s30 = smov 0   ;;  %s3169_s10 = smov 0  }
   0xa   :  { %s3171_s11 = smov 0   ;;  %s3173_s12 = smov 0  }
   0xb   :  { %s3175_s13 = smov 0   ;;  %s3177_s14 = smov 0  }
   0xc LB: > { %3600 = sst [smem:[#allocation18_spill]] %s3093_s12  ;;  %s3591_s15 = sadd.s32 4294967295, %s3101_s14   ;;  %s3101_s14 = sphi %s3177_s14, %s27_s14   ;;  %s3097_s13 = sphi %s3175_s13, %s3625_s13   ;;  %s3093_s12 = sphi %s3173_s12, %s3624_s12   ;;  %s3089_s11 = sphi %s3171_s11, %s3623_s11   ;;  %s3085_s10 = sphi %s3169_s10, %s3622_s10   ;;  %s3081_s30 = sphi %s3167_s30, %s3621_s30  }
   0xd   : > { %p2535_p0 = scmp.ge.s32.totalorder %s3101_s14, 1  ;;  %p3201_p1 = scmp.eq.s32.totalorder %s3591_s15, 0 }
   0xe   : > { %p266_p2 = scmp.lt.s32.totalorder %s3101_s14, 3  ;;  %s3103_s18 = smov [#allocation7]  }
   0xf   : > { %s3601_s16 = scalar_select %p3201_p1, 1, 0 }
  0x10   : > { %p3206_p3 = pnand %p2535_p0, %p266_p2  ;;  %s278_s19 = sshll.u32 %s3103_s18, 4  ;;  %s3210_s19 = int_to_ptr.vmem [resolvable:$true] %s278_s19 }
  0x11   : > { %s3104_s21 = smov [#allocation10]   ;;  %s3105_s23 = smov [#allocation9]  }
  0x12   : > { %s3602_s17 = scalar_select %p3206_p3, 1, 0 }
  0x13   : > { %p2778_p4 = pneg %p3206_p3  ;;  %s304_s22 = sshll.u32 %s3104_s21, 4  ;;  %s3221_s22 = int_to_ptr.vmem [resolvable:$true] %s304_s22 }
  0x14   : > { %s3223_s24 = sshll.u32 %s3105_s23, 4  ;;  %s3604_s1 = sld [smem:[#allocation19_spill]]  ;;  %s292_s24 = int_to_ptr.vmem [resolvable:$true] %s3223_s24 }
  0x15   : > { %p3217_p6 = pnand %p2778_p4, %p3201_p1 }
  0x17   : > { %p3233_p8 = pneg %p3217_p6 }
  0x1a   : > { %s2869_s27 = scalar_lea.hbm %s3604_s1, 512 }
  0x1b   : > { %p2870_p7 = scmp.ne.s32.totalorder %s3604_s1, %s2869_s27  ;;  %p2876_p11 = scmp.lt.u32.totalorder %s2869_s27, %s3604_s1 }
  0x1d   : > { %p2872_p9 = pnand %p3233_p8, %p2870_p7 }
  0x1f   : > { %p2873_p10 = pneg %p2872_p9 }
  0x21   : > { %p2878_p12 = pnand %p2876_p11, %p2873_p10 }
  0x23   : > { %2881 = shalt.err (!%p2878_p12)
}
  0x24   : > { %s2882_s25 = scalar_lea.vmem %s3210_s19, 512  ;;  %p2890_p4 = scmp.lt.s32.totalorder %s3210_s19, %s3210_s19 }
  0x25   : > { %p2883_p13 = scmp.ne.s32.totalorder %s3210_s19, %s2882_s25  ;;  %p2891_p5 = scmp.lt.s32.totalorder %s2882_s25, %s2882_s25 }
  0x27   : > { %p2885_p0 = pnand %p2883_p13, %p3233_p8  ;;  %p2892_p7 = por %p2891_p5, %p2890_p4 }
  0x29   : > { %p2886_p2 = pneg %p2885_p0 }
  0x2b   : > { %p2893_p9 = pnand %p2892_p7, %p2886_p2 }
  0x2d   : > { %2896 = shalt.err (!%p2893_p9)
}
  0x2e   : > { %s3106_s26 = smov 128   ;;  %s3107_s27 = smov 8  }
  0x2f   : > { %2781 = dma.hbm_to_vmem [thread:$0]  (!%p3217_p6), %s3604_s1, 512, %s3210_s19, [#allocation8], %s3106_s26, %s3106_s26, %s3107_s27  }
  0x30   : > { %s2897_s25 = scalar_lea.hbm %s3584_s3, 512 }
  0x31   : > { %p2898_p5 = scmp.ne.s32.totalorder %s3584_s3, %s2897_s25  ;;  %p2904_p12 = scmp.lt.u32.totalorder %s2897_s25, %s3584_s3 }
  0x33   : > { %p2900_p10 = pnand %p2898_p5, %p3233_p8 }
  0x35   : > { %p2901_p11 = pneg %p2900_p10 }
  0x37   : > { %p2906_p13 = pnand %p2904_p12, %p2901_p11 }
  0x39   : > { %2909 = shalt.err (!%p2906_p13)
}
  0x3a   : > { %s2910_s19 = scalar_lea.vmem %s3221_s22, 512  ;;  %p2918_p7 = scmp.lt.s32.totalorder %s3221_s22, %s3221_s22 }
  0x3b   : > { %p2911_p0 = scmp.ne.s32.totalorder %s3221_s22, %s2910_s19  ;;  %p2919_p9 = scmp.lt.s32.totalorder %s2910_s19, %s2910_s19 }
  0x3d   : > { %p2913_p2 = pnand %p2911_p0, %p3233_p8  ;;  %p2920_p5 = por %p2919_p9, %p2918_p7 }
  0x3f   : > { %p2914_p4 = pneg %p2913_p2 }
  0x41   : > { %p2921_p10 = pnand %p2920_p5, %p2914_p4 }
  0x43   : > { %2924 = shalt.err (!%p2921_p10)
}
  0x44   : > { %2787 = dma.hbm_to_vmem [thread:$0]  (!%p3217_p6), %s3584_s3, 512, %s3221_s22, [#allocation11], %s3106_s26, %s3106_s26, %s3107_s27  }
  0x45   : > { %s2925_s28 = scalar_lea.hbm %s3583_s2, 512 }
  0x46   : > { %p2926_p11 = scmp.ne.s32.totalorder %s3583_s2, %s2925_s28  ;;  %p2932_p0 = scmp.lt.u32.totalorder %s2925_s28, %s3583_s2 }
  0x48   : > { %p2928_p12 = pnand %p2926_p11, %p3233_p8 }
  0x4a   : > { %p2929_p13 = pneg %p2928_p12 }
  0x4c   : > { %p2934_p2 = pnand %p2932_p0, %p2929_p13 }
  0x4e   : > { %2937 = shalt.err (!%p2934_p2)
}
  0x4f   : > { %s2938_s19 = scalar_lea.vmem %s292_s24, 512  ;;  %p2946_p5 = scmp.lt.s32.totalorder %s292_s24, %s292_s24 }
  0x50   : > { %p2939_p4 = scmp.ne.s32.totalorder %s292_s24, %s2938_s19  ;;  %p2947_p10 = scmp.lt.s32.totalorder %s2938_s19, %s2938_s19 }
  0x52   : > { %p2941_p7 = pnand %p2939_p4, %p3233_p8  ;;  %p2948_p3 = por %p2947_p10, %p2946_p5 }
  0x54   : > { %p2942_p9 = pneg %p2941_p7 }
  0x56   : > { %p2949_p1 = pnand %p2948_p3, %p2942_p9 }
  0x58   : > { %2952 = shalt.err (!%p2949_p1)
}
  0x59   : > { %2784 = dma.hbm_to_vmem [thread:$0]  (!%p3217_p6), %s3583_s2, 512, %s292_s24, [#allocation8], %s3106_s26, %s3106_s26, %s3107_s27  }
  0x5a   : > { %s3108_s9 = smov [#allocation12]   ;;  %s2953_s29 = scalar_lea.hbm %s3588_s7, 512 }
  0x5b   : > { %s326_s12 = sshll.u32 %s3108_s9, 4  ;;  %p2954_p1 = scmp.ne.s32.totalorder %s3588_s7, %s2953_s29  ;;  %s327_s12 = int_to_ptr.vmem [resolvable:$true] %s326_s12 }
  0x5c   : > { %p2960_p12 = scmp.lt.u32.totalorder %s2953_s29, %s3588_s7 }
  0x5d   : > { %p2956_p3 = pnand %p2954_p1, %p3233_p8 }
  0x5f   : > { %p2957_p11 = pneg %p2956_p3 }
  0x61   : > { %p2962_p13 = pnand %p2960_p12, %p2957_p11 }
  0x63   : > { %2965 = shalt.err (!%p2962_p13)
}
  0x64   : > { %s2966_s24 = scalar_lea.vmem %s327_s12, 512  ;;  %p2974_p7 = scmp.lt.s32.totalorder %s327_s12, %s327_s12 }
  0x65   : > { %p2967_p0 = scmp.ne.s32.totalorder %s327_s12, %s2966_s24  ;;  %p2975_p9 = scmp.lt.s32.totalorder %s2966_s24, %s2966_s24 }
  0x67   : > { %p2969_p2 = pnand %p2967_p0, %p3233_p8  ;;  %p2976_p5 = por %p2975_p9, %p2974_p7 }
  0x69   : > { %p2970_p4 = pneg %p2969_p2 }
  0x6b   : > { %p2977_p10 = pnand %p2976_p5, %p2970_p4 }
  0x6d   : > { %2980 = shalt.err (!%p2977_p10)
}
  0x6e   : > { %2790 = dma.hbm_to_vmem [thread:$0]  (!%p3217_p6), %s3588_s7, 512, %s327_s12, [#allocation11], %s3106_s26, %s3106_s26, %s3107_s27  }
  0x6f   : > { %s2534_s20 = sadd.s32 4294967294, %s3101_s14   ;;  %s39_s18 = sadd.s32 1, %s3097_s13 }
  0x70   : > { %p41_p8 = scmp.ge.s32.totalorder %s39_s18, 2  ;;  %s46_s9 = sadd.s32 1, %s3089_s11 }
  0x71   : > { %p53_p1 = scmp.ne.s32.totalorder %s3089_s11, %s3085_s10  ;;  %p54_p3 = scmp.eq.s32.totalorder %s3101_s14, 0 }
  0x72   : > { %s3627_s18 = smov (%p41_p8, %s39_s18), 0  ;;  %p59_p12 = scmp.ne.s32.totalorder %s3085_s10, %s3081_s30 }
  0x73   : > { %p3334_p11 = por %p54_p3, %p53_p1  ;;  %s43_s26 = ssub.s32 %s3097_s13, %s3627_s18 }
  0x74   : > { %s3607_s27 = sadd.s32 4294967295, %s3101_s14   ;;  %p44_p13 = scmp.eq.s32.totalorder %s43_s26, 0 }
  0x75   : > { %p253_p6 = scmp.eq.s32.totalorder %s3607_s27, 1  ;;  %p3608_p0 = scmp.ne.s32.totalorder %s3601_s16, 0 }
  0x76   : > { %p259_p7 = scmp.eq.s32.totalorder %s2534_s20, 1  ;;  %p2803_p5 = scmp.lt.s32.totalorder %s3101_s14, 2 }
  0x77   : > { %p3346_p2 = por %p3608_p0, %p59_p12  ;;  %p3350_p4 = por %p253_p6, %p53_p1 }
  0x78   : > { %s3355_s29 = scalar_select %p44_p13, %s3089_s11, %s46_s9  }
  0x79   : > { %s3610_s28 = scalar_select %p3350_p4, 1, 0 }
  0x7a   : > { %p3357_p9 = por %p259_p7, %p59_p12  ;;  %s343_s23 = sand.u32 1, %s3089_s11  }
  0x7b   : > { %s2542_s25 = sshll.u32 %s3097_s13, 7  ;;  %s2541_s19 = sshll.u32 %s343_s23, 3 }
  0x7c   : > { %s3611_s21 = scalar_select %p3357_p9, 1, 0 }
  0x7d   : > { %s3367_s8 = scalar_lea.hbm %s3581_s0, %s2542_s25  ;;  %s347_s20 = scalar_lea.vmem [#allocation4], %s2541_s19 }
  0x7e   : > { %s354_s9 = sshll.u32 %s347_s20, 4  ;;  %p3371_p10 = pnand %p2803_p5, %p3334_p11  ;;  %s3375_s9 = int_to_ptr.vmem [resolvable:$true] %s354_s9 }
  0x7f   : > { %s344_s27 = scalar_lea.sflag [#allocation5], %s343_s23  ;;  %s2981_s1 = scalar_lea.hbm %s3367_s8, 128 }
  0x80   : > { %p2982_p8 = scmp.ne.s32.totalorder %s3367_s8, %s2981_s1  ;;  %p2983_p1 = pneg %p3371_p10 }
  0x81   : > { %s2986_s15 = scalar_lea.hbm %s3581_s0, 256  ;;  %p2987_p11 = scmp.lt.u32.totalorder %s3367_s8, %s3581_s0 }
  0x82   : > { %p2984_p3 = pnand %p2983_p1, %p2982_p8  ;;  %p2988_p6 = scmp.lt.u32.totalorder %s2986_s15, %s2981_s1 }
  0x83   : > { %p2990_p0 = scmp.lt.u32.totalorder %s2981_s1, %s3367_s8 }
  0x84   : > { %p2985_p12 = pneg %p2984_p3  ;;  %p2989_p13 = por %p2988_p6, %p2987_p11 }
  0x86   : > { %p2991_p7 = por %p2990_p0, %p2989_p13 }
  0x88   : > { %p2992_p5 = pnand %p2991_p7, %p2985_p12 }
  0x8a   : > { %2995 = shalt.err (!%p2992_p5)
}
  0x8b   : > { %s2996_s23 = scalar_lea.vmem %s3375_s9, 128  ;;  %s3109_s20 = smov [#allocation4]  }
  0x8c   : > { %p2997_p8 = scmp.ne.s32.totalorder %s3375_s9, %s2996_s23  ;;  %s3001_s25 = sshll.u32 %s3109_s20, 4  ;;  %s3002_s25 = int_to_ptr.vmem [resolvable:$false] %s3001_s25 }
  0x8d   : > { %s3003_s19 = scalar_lea.vmem %s3002_s25, 256  ;;  %p3004_p4 = scmp.lt.s32.totalorder %s3375_s9, %s3002_s25 }
  0x8e   : > { %p2999_p3 = pnand %p2997_p8, %p2983_p1  ;;  %p3005_p11 = scmp.lt.s32.totalorder %s3003_s19, %s2996_s23 }
  0x90   : > { %p3000_p9 = pneg %p2999_p3  ;;  %p3006_p6 = por %p3005_p11, %p3004_p4 }
  0x92   : > { %p3007_p13 = pnand %p3006_p6, %p3000_p9 }
  0x94   : > { %3010 = shalt.err (!%p3007_p13)
}
  0x95   : > { %2794 = dma.hbm_to_vmem [thread:$0]  (!%p3371_p10), %s3367_s8, 128, %s3375_s9, %s344_s27  }
  0x96   : > { %p3613_p12 = scmp.ne.s32.totalorder %s3602_s17, 0 }
  0x97   : > { %s3405_s1 = sand.u32 (!%p3613_p12), 1, %s3085_s10  }
  0x98   : > { %363 = sbr.rel (%p3613_p12) target bundleno = 1825 (0x721), region = 56  ;;  %s2544_s15 = sshll.u32 (!%p3613_p12), %s3405_s1, 3 }
  0x99   : > { %s366_s24 = scalar_lea.sflag (!%p3613_p12), [#allocation5], %s3405_s1  ;;  %s3411_s22 = scalar_lea.vmem (!%p3613_p12), [#allocation4], %s2544_s15 }
  0x9f   : > { %3064 = dma.done.wait (%p3346_p2), %s366_s24, 128  }
  0xa0   : > { %3066 = vsyncadd (%p3346_p2), %s366_s24, 4294967168  ;;  %p3614_p4 = scmp.ne.s32.totalorder %s3601_s16, 0 }
  0xa2   : > { %3068 = dma.done.wait (%p3614_p4), [#allocation8], 1024  }
  0xa3   : > { %3070 = vsyncadd (%p3614_p4), [#allocation8], 4294966272 }
  0xa4   : > { %3072 = dma.done.wait (%p3614_p4), [#allocation11], 1024  }
  0xa5   : > { %3074 = vsyncadd (%p3614_p4), [#allocation11], 4294966272  ;;  %v3110_v0 = vmov 0.0|0.0   ;;  %vm3111_vm0 = vmmov 0   ;;  %v3112_v1 = vmov 0.0   ;;  %v425_v2 = vld [vmem:[#allocation9] sm:$0xff]  ;;  %v718_v48 = vlaneseq }
  0xa6   : > { %2740 = vmatprep.subr.bf16.mxu0 %v3110_v0  ;;  %2746 = vmatprep.subr.bf16.mxu1 %v3110_v0  ;;  %v426_v3 = vld [vmem:[#allocation9 + $0x8] sm:$0xff]  ;;  %v511_v4 = vld [vmem:[#allocation10] sm:$0xff]  ;;  %v427_v7 = vld [vmem:[#allocation9 + $0x10] sm:$0xff]  ;;  %vm436_vm1 = vcmask 261120   ;;  %vm593_vm2 = vcmask 64512   ;;  %s3113_s9 = smov 120  }
  0xa7   : > { %2655 = vmatprep.mubr.msk.f32.mxu0 %vm3111_vm0, %v3112_v1  ;;  %2666 = vmatprep.mubr.msk.f32.mxu1 %vm3111_vm0, %v3112_v1  ;;  %v2741_v5 = vpack.c.bf16 %v426_v3, %v425_v2  ;;  %v512_v6 = vld [vmem:[#allocation10 + $0x8] sm:$0xff]  ;;  %v428_v8 = vld [vmem:[#allocation9 + $0x18] sm:$0xff]  ;;  %v513_v10 = vld [vmem:[#allocation10 + $0x10] sm:$0xff]  ;;  %s3114_s23 = smov 112   ;;  %s3115_s20 = smov 104   ;;  %v3469_v49 = vshrl.u32 %v718_v48, 7 }
  0xa8   : > { %v2747_v9 = vpack.c.bf16 %v512_v6, %v511_v4  ;;  %v514_v11 = vld [vmem:[#allocation10 + $0x18] sm:$0xff]  ;;  %v2744_v12 = vpack.c.bf16 %v428_v8, %v427_v7  ;;  %v631_v14 = vld [vmem:[#allocation7] sm:$0xff]  ;;  %v632_v15 = vld [vmem:[#allocation7 + $0x8] sm:$0xff]  ;;  %v3471_v50 = vand.u32 127, %v718_v48  ;;  %s3615_s25 = sld [smem:[#allocation18_spill]]  ;;  %s419_s17 = scalar_lea.vmem [#allocation13], %s2544_s15 }
  0xa9   : > { %2742 = vmatpush3.bf16.msra.mxu0 %v2741_v5  ;;  %v2750_v13 = vpack.c.bf16 %v514_v11, %v513_v10  ;;  %v424_v16 = vld [vmem:[%s3411_s22] sm:$0xff]  ;;  %v2753_v17 = vpack.c.bf16 %v632_v15, %v631_v14  ;;  %v1369_v56 = vld [vmem:[#allocation12 + $0x8] sm:$0xff]  ;;  %v1044_v60 = vld [vmem:[#allocation12] sm:$0xff]  ;;  %s3616_s22 = sld [smem:[#allocation20_spill]]  ;;  %s2338_s12 = sshll.u32 %s419_s17, 4  ;;  %s3533_s12 = int_to_ptr.vmem [resolvable:$true] %s2338_s12 }
  0xaa   : > { %2748 = vmatpush3.bf16.msra.mxu1 %v2747_v9  ;;  %2743 = vmatprep.subr.bf16.mxu0 %v3110_v0  ;;  %v633_v18 = vld [vmem:[#allocation7 + $0x10] sm:$0xff]  ;;  %v634_v19 = vld [vmem:[#allocation7 + $0x18] sm:$0xff]  ;;  %vm722_vm3 = vcmp.le.s32.totalorder %v3471_v50, %v3469_v49  ;;  %s3617_s26 = sld [smem:[#allocation21_spill]]  ;;  %p3618_p9 = scmp.ne.s32.totalorder %s3610_s28, 0 }
  0xab   : > { %2749 = vmatprep.subr.bf16.mxu1 %v3110_v0  ;;  %v2756_v20 = vpack.c.bf16 %v634_v19, %v633_v18  ;;  %v2550_v21 = vld [vmem:[%s3586_s5] ss:$0 sm:$0xff]  ;;  %s3116_s15 = smov [#allocation13]  }
  0xac   : > { %v2552_v22 = vld [vmem:[%s3587_s6] ss:$0 sm:$0xff] }
  0xad   : > { %2745 = vmatpush3.bf16.msra.mxu0 %v2744_v12  ;;  %v2554_v31 = vld [vmem:[%s3585_s4] ss:$0 sm:$0xff] }
  0xae   : > { %2751 = vmatpush3.bf16.msra.mxu1 %v2750_v13  ;;  %2752 = vmatprep.subr.bf16.mxu0 %v3110_v0  ;;  %v1840_v5 = vld [vmem:[#allocation12 + $0x10] sm:$0xff]  ;;  %s2605_s16 = sshll.u32 %s3615_s25, 7  ;;  %s3015_s25 = sshll.u32 %s3116_s15, 4  ;;  %s3016_s25 = int_to_ptr.vmem [resolvable:$false] %s3015_s25 }
  0xaf   : > { %2680 = vmatprep.subr.mxu1 %v3112_v1  ;;  %s3017_s19 = scalar_lea.vmem %s3016_s25, 256  ;;  %p3018_p0 = scmp.lt.s32.totalorder %s3533_s12, %s3016_s25 }
  0xb0   : > { %2656 = vmatmul.mubr.msk.f32.vlgmr.msra.gmra.mrb[0].mxu0 %vm436_vm1, %v424_v16  ;;  %s3531_s27 = scalar_lea.hbm %s3617_s26, %s2605_s16 }
  0xb1   : > { %2667 = vmatmul.mubr.msk.f32.vlgmr.msra.gmra.mrb[0].mxu1 %vm436_vm1, %v424_v16  ;;  %2754 = vmatpush3.bf16.msra.mxu0 %v2753_v17 }
  0xb2   : > { %2755 = vmatprep.subr.bf16.mxu0 %v3110_v0  ;;  %2677 = vmatprep.mubr.msk.f32.mxu0 %vm3111_vm0, %v3112_v1 }
  0xb3   : > { %2682 = vmatprep.mubr.msk.f32.mxu1 %vm3111_vm0, %v3112_v1 }
  0xb5   : > { %2757 = vmatpush3.bf16.msra.mxu0 %v2756_v20 }
  0xb6   : > { %2690 = vmatprep.subr.mxu0 %v3112_v1 }
  0xb8   : > { %2678 = vmatmul.mubr.msk.f32.vlgmr.msra.gmra.mrb[2].mxu0 %vm436_vm1, %v424_v16 }
  0xb9   : > { %2692 = vmatprep.mubr.msk.f32.mxu0 %vm3111_vm0, %v3112_v1 }
 0x183   : > { %v506_v23 = vpop.f32.mrb[0].mxu0 }
 0x184   : > { %v507_v24 = vadd.f32 %v2550_v21, %v506_v23  ;;  %v588_v25 = vpop.f32.mrb[0].mxu1  ;;  %v2657_v26 = vpop.f32.mrb[1].mxu0 }
 0x185   : > { %v589_v27 = vadd.f32 %v2552_v22, %v588_v25  ;;  %v2668_v28 = vpop.f32.mrb[1].mxu1 }
 0x186   : > { %v510_v29 = vmax.f32 %v507_v24, 0.0  ;;  %v2239_v24 = vld [vmem:[#allocation12 + $0x18] sm:$0xff] }
 0x187   : > { %v592_v30 = vmax.f32 %v589_v27, 0.0 }
 0x188   : > { %594 = vst.msk [vmem:[#allocation2] sm:$0xff] %vm593_vm2, %v510_v29  ;;  %597 = vrot.lane.b32.xlu0 %v510_v29, %s3113_s9 }
 0x189   : > { %595 = vst.msk [vmem:[#allocation3] sm:$0xff] %vm593_vm2, %v592_v30  ;;  %603 = vrot.lane.b32.xlu1 %v592_v30, %s3113_s9 }
 0x18b   : > { %v712_v32 = vpop.f32.mrb[2].mxu0 }
 0x18c   : > { %v713_v33 = vadd.f32 %v2554_v31, %v712_v32  ;;  %v2679_v34 = vpop.f32.mrb[3].mxu0 }
 0x18d   : > { %608 = vrot.lane.b32.xlu1 %v510_v29, %s3114_s23 }
 0x18e   : > { %v716_v35 = vmax.f32 %v713_v33, 0.0 }
 0x18f   : > { %v888_v36 = vld [vmem:[#allocation2] sm:$0xff] }
 0x190   : > { %v717_v37 = vmul.f32 0.35355338, %v716_v35  ;;  %2681 = vmatpush3.xpose.msk.msra.mxu1 %vm593_vm2, %v888_v36  ;;  %v890_v38 = vld [vmem:[#allocation3] sm:$0xff] }
 0x191   : > { %613 = vrot.lane.b32.xlu1 %v592_v30, %s3114_s23  ;;  %2685 = vmatprep.subr.mxu1 %v3112_v1 }
 0x192   : > { %1215 = vrot.lane.b32.xlu0 %v717_v37, %s3113_s9 }
 0x193   : > { %2683 = vmatmul.mubr.msk.f32.vlgmr.msra.gmra.mrb[2].mxu1 %vm593_vm2, %v717_v37 }
 0x194   : > { %2687 = vmatprep.mubr.msk.f32.mxu1 %vm3111_vm0, %v3112_v1  ;;  %2686 = vmatpush3.msra.mxu1 %v890_v38 }
 0x195   : > { %2085 = vrot.lane.b32.xlu1 %v717_v37, %s3115_s20  ;;  %2695 = vmatprep.subr.mxu1 %v3112_v1 }
 0x196   : > { %1686 = vrot.lane.b32.xlu0 %v717_v37, %s3114_s23  ;;  %s2324_s23 = scalar_lea.sflag [#allocation6], %s3405_s1 }
 0x19a   : > { %618 = vrot.lane.b32.xlu0 %v510_v29, %s3115_s20 }
 0x19e   : > { %623 = vrot.lane.b32.xlu0 %v592_v30, %s3115_s20  ;;  %v2603_v30 = vld [vmem:[%s3616_s22] ss:$0 sm:$0xff]  ;;  %s3011_s20 = scalar_lea.vmem %s3533_s12, 128 }
 0x19f   : > { %p3012_p2 = scmp.ne.s32.totalorder %s3533_s12, %s3011_s20  ;;  %p3019_p7 = scmp.lt.s32.totalorder %s3017_s19, %s3011_s20 }
 0x1a1   : > { %p3013_p10 = pnand %p3012_p2, %p3618_p9  ;;  %p3020_p5 = por %p3019_p7, %p3018_p0 }
 0x1a3   : > { %p3014_p1 = pneg %p3013_p10 }
 0x1a5   : > { %p3021_p8 = pnand %p3020_p5, %p3014_p1 }
 0x1fa   : > { %v598_v39 = vpop.permute.xlu0 %597 }
 0x1fb   : > { %v604_v40 = vpop.permute.xlu1 %603  ;;  %601 = vst.msk [vmem:[#allocation2 + $0x8] sm:$0xff] %vm593_vm2, %v598_v39 }
 0x1fc   : > { %607 = vst.msk [vmem:[#allocation3 + $0x8] sm:$0xff] %vm593_vm2, %v604_v40 }
 0x1ff   : > { %v609_v41 = vpop.permute.xlu1 %608 }
 0x200   : > { %612 = vst.msk [vmem:[#allocation2 + $0x10] sm:$0xff] %vm593_vm2, %v609_v41 }
 0x202   : > { %v2570_v42 = vld [vmem:[#allocation2 + $0x8] sm:$0xff] }
 0x203   : > { %v614_v43 = vpop.permute.xlu1 %613  ;;  %2691 = vmatpush3.xpose.msk.msra.mxu0 %vm593_vm2, %v2570_v42  ;;  %v2571_v54 = vld [vmem:[#allocation3 + $0x8] sm:$0xff] }
 0x204   : > { %617 = vst.msk [vmem:[#allocation3 + $0x10] sm:$0xff] %vm593_vm2, %v614_v43  ;;  %v1216_v44 = vpop.permute.xlu0 %1215  ;;  %2700 = vmatprep.subr.mxu0 %v3112_v1 }
 0x206   : > { %2693 = vmatmul.mubr.msk.f32.vlgmr.msra.gmra.mrb[4].mxu0 %vm593_vm2, %v1216_v44 }
 0x207   : > { %2702 = vmatprep.mubr.msk.f32.mxu0 %vm3111_vm0, %v3112_v1  ;;  %2701 = vmatpush3.msra.mxu0 %v1369_v56  ;;  %v2584_v4 = vld [vmem:[#allocation2 + $0x10] sm:$0xff]  ;;  %v2086_v16 = vpop.permute.xlu1 %2085 }
 0x208   : > { %v1687_v45 = vpop.permute.xlu0 %1686  ;;  %2710 = vmatprep.subr.mxu0 %v3112_v1 }
 0x20b   : > { %v2585_v0 = vld [vmem:[#allocation3 + $0x10] sm:$0xff] }
 0x20c   : > { %v619_v46 = vpop.permute.xlu0 %618 }
 0x20d   : > { %622 = vst.msk [vmem:[#allocation2 + $0x18] sm:$0xff] %vm593_vm2, %v619_v46 }
 0x210   : > { %v624_v47 = vpop.permute.xlu0 %623 }
 0x211   : > { %627 = vst.msk [vmem:[#allocation3 + $0x18] sm:$0xff] %vm593_vm2, %v624_v47 }
 0x214   : > { %v2597_v15 = vld [vmem:[#allocation2 + $0x18] sm:$0xff] }
 0x218   : > { %v2598_v19 = vld [vmem:[#allocation3 + $0x18] sm:$0xff] }
 0x266   : > { %v964_v51 = vpop.f32.mrb[2].mxu1 }
 0x267   : > { %v968_v52 = vmax.f32 %v964_v51, 0.0  ;;  %v2684_v53 = vpop.f32.mrb[3].mxu1 }
 0x269   : > { %v969_v55 = vsel %vm722_vm3, %v968_v52, 0.0 }
 0x26a   : > { %2688 = vmatmul.mubr.msk.f32.vlgmr.msra.gmra.mrb[4].mxu1 %vm593_vm2, %v969_v55 }
 0x26b   : > { %2696 = vmatpush3.msra.mxu1 %v2571_v54  ;;  %2697 = vmatprep.mubr.msk.f32.mxu1 %vm3111_vm0, %v3112_v1 }
 0x26c   : > { %2705 = vmatprep.subr.mxu1 %v3112_v1 }
 0x2d9   : > { %v1288_v57 = vpop.f32.mrb[4].mxu0 }
 0x2da   : > { %v1292_v58 = vmax.f32 %v1288_v57, 0.0  ;;  %v2694_v59 = vpop.f32.mrb[5].mxu0 }
 0x2dc   : > { %v1293_v61 = vsel %vm722_vm3, %v1292_v58, 0.0 }
 0x2dd   : > { %2698 = vmatmul.mubr.msk.f32.vlgmr.msra.gmra.mrb[6].mxu1 %vm593_vm2, %v1293_v61 }
 0x2de   : > { %2706 = vmatpush3.msra.mxu1 %v1044_v60  ;;  %2707 = vmatprep.mubr.msk.f32.mxu1 %vm3111_vm0, %v3112_v1 }
 0x2df   : > { %2715 = vmatprep.subr.mxu1 %v3112_v1 }
 0x33d   : > { %v1039_v62 = vpop.f32.mrb[4].mxu1 }
 0x33e   : > { %v2689_v63 = vpop.f32.mrb[5].mxu1  ;;  %2708 = vmatmul.mubr.msk.f32.vlgmr.msra.gmra.mrb[8].mxu1 %vm593_vm2, %v1039_v62 }
 0x33f   : > { %2716 = vmatpush3.msra.mxu1 %v2585_v0  ;;  %2717 = vmatprep.mubr.msk.f32.mxu1 %vm3111_vm0, %v3112_v1 }
 0x340   : > { %2725 = vmatprep.subr.mxu1 %v3112_v1 }
 0x3b0   : > { %v1363_v2 = vpop.f32.mrb[6].mxu1 }
 0x3b1   : > { %v2699_v3 = vpop.f32.mrb[7].mxu1  ;;  %2703 = vmatmul.mubr.msk.f32.vlgmr.msra.gmra.mrb[6].mxu0 %vm593_vm2, %v1363_v2 }
 0x3b2   : > { %2711 = vmatpush3.xpose.msk.msra.mxu0 %vm593_vm2, %v2584_v4  ;;  %2712 = vmatprep.mubr.msk.f32.mxu0 %vm3111_vm0, %v3112_v1 }
 0x3b3   : > { %2720 = vmatprep.subr.mxu0 %v3112_v1 }
 0x3b5   : > { %2713 = vmatmul.mubr.msk.f32.vlgmr.msra.gmra.mrb[8].mxu0 %vm593_vm2, %v1687_v45 }
 0x3b6   : > { %2722 = vmatprep.mubr.msk.f32.mxu0 %vm3111_vm0, %v3112_v1  ;;  %2721 = vmatpush3.msra.mxu0 %v1840_v5 }
 0x3b7   : > { %2730 = vmatprep.subr.mxu0 %v3112_v1 }
 0x411   : > { %v1512_v6 = vpop.f32.mrb[8].mxu1 }
 0x412   : > { %v2709_v7 = vpop.f32.mrb[9].mxu1 }
 0x484   : > { %v1439_v8 = vpop.f32.mrb[6].mxu0 }
 0x485   : > { %v1513_v9 = vadd.f32 %v1512_v6, %v1439_v8  ;;  %v2704_v10 = vpop.f32.mrb[7].mxu0 }
 0x488   : > { %v1759_v11 = vpop.f32.mrb[8].mxu0 }
 0x489   : > { %v1763_v12 = vmax.f32 %v1759_v11, 0.0  ;;  %v2714_v13 = vpop.f32.mrb[9].mxu0 }
 0x48b   : > { %v1764_v14 = vsel %vm722_vm3, %v1763_v12, 0.0 }
 0x48c   : > { %2718 = vmatmul.mubr.msk.f32.vlgmr.msra.gmra.mrb[10].mxu1 %vm593_vm2, %v1764_v14 }
 0x48d   : > { %2726 = vmatpush3.xpose.msk.msra.mxu1 %vm593_vm2, %v2597_v15  ;;  %2727 = vmatprep.mubr.msk.f32.mxu1 %vm3111_vm0, %v3112_v1 }
 0x48e   : > { %2735 = vmatprep.subr.mxu1 %v3112_v1 }
 0x490   : > { %2728 = vmatmul.mubr.msk.f32.vlgmr.msra.gmra.mrb[12].mxu1 %vm593_vm2, %v2086_v16 }
 0x491   : > { %2737 = vmatprep.mubr.msk.f32.mxu1 %vm3111_vm0, %v3112_v1  ;;  %2736 = vmatpush3.msra.mxu1 %v2239_v24 }
 0x55f   : > { %v1834_v17 = vpop.f32.mrb[10].mxu1 }
 0x560   : > { %v2719_v18 = vpop.f32.mrb[11].mxu1  ;;  %2723 = vmatmul.mubr.msk.f32.vlgmr.msra.gmra.mrb[10].mxu0 %vm593_vm2, %v1834_v17 }
 0x561   : > { %2731 = vmatpush3.msra.mxu0 %v2598_v19  ;;  %2732 = vmatprep.mubr.msk.f32.mxu0 %vm3111_vm0, %v3112_v1 }
 0x563   : > { %v2158_v20 = vpop.f32.mrb[12].mxu1 }
 0x564   : > { %v2162_v21 = vmax.f32 %v2158_v20, 0.0  ;;  %v2729_v22 = vpop.f32.mrb[13].mxu1 }
 0x566   : > { %v2163_v23 = vsel %vm722_vm3, %v2162_v21, 0.0 }
 0x567   : > { %2733 = vmatmul.mubr.msk.f32.vlgmr.msra.gmra.mrb[12].mxu0 %vm593_vm2, %v2163_v23 }
 0x633   : > { %v1910_v25 = vpop.f32.mrb[10].mxu0 }
 0x634   : > { %v1914_v26 = vadd.f32 %v1910_v25, %v1513_v9  ;;  %v2724_v27 = vpop.f32.mrb[11].mxu0 }
 0x63a   : > { %v2233_v28 = vpop.f32.mrb[12].mxu0 }
 0x63b   : > { %v2734_v29 = vpop.f32.mrb[13].mxu0  ;;  %2738 = vmatmul.mubr.msk.f32.vlgmr.msra.gmra.mrb[14].mxu1 %vm593_vm2, %v2233_v28 }
 0x70e   : > { %v2309_v1 = vpop.f32.mrb[14].mxu1 }
 0x70f   : > { %v2313_v31 = vadd.f32 %v2309_v1, %v1914_v26  ;;  %v2739_v32 = vpop.f32.mrb[15].mxu1 }
 0x711   : > { %v2321_v33 = vadd.f32 %v2603_v30, %v2313_v31 }
 0x713   : > { %2322 = vst.msk [vmem:[%s419_s17] sm:$0xff] %vm436_vm1, %v2321_v33 }
 0x714   : > { %3024 = shalt.err (!%p3021_p8)
}
 0x715   : > { %s3025_s1 = scalar_lea.hbm %s3531_s27, 128  ;;  %s3029_s16 = scalar_lea.hbm %s3617_s26, 256 }
 0x716   : > { %p3026_p3 = scmp.ne.s32.totalorder %s3531_s27, %s3025_s1  ;;  %p3030_p13 = scmp.lt.u32.totalorder %s3531_s27, %s3617_s26 }
 0x717   : > { %p3031_p12 = scmp.lt.u32.totalorder %s3029_s16, %s3025_s1  ;;  %p3033_p2 = scmp.lt.u32.totalorder %s3025_s1, %s3531_s27 }
 0x718   : > { %p3027_p11 = pnand %p3026_p3, %p3618_p9 }
 0x719   : > { %p3032_p4 = por %p3031_p12, %p3030_p13 }
 0x71a   : > { %p3028_p6 = pneg %p3027_p11 }
 0x71b   : > { %p3034_p10 = por %p3033_p2, %p3032_p4 }
 0x71d   : > { %p3035_p1 = pnand %p3034_p10, %p3028_p6 }
 0x71f   : > { %3038 = shalt.err (!%p3035_p1)
}
 0x720   : > { %2776 = dma.vmem_to_hbm [thread:$0]  (%p3618_p9), %s3533_s12, 128, %s3531_s27, %s2324_s23  }
 0x721 PF: > { %s2350_s9 = sand.u32 1, %s3081_s30   ;;  %p3619_p0 = scmp.ne.s32.totalorder %s3611_s21, 0 }
 0x722   : > { %p3620_p7 = scmp.ge.s32.totalorder %s3101_s14, 2  ;;  %s2351_s20 = scalar_lea.sflag [#allocation6], %s2350_s9 }
 0x724   : > { %p2796_p5 = pnand %p3620_p7, %p3619_p0 }
 0x726   : > { %3076 = dma.done.wait (!%p2796_p5), %s2351_s20, 128  }
 0x727   : > { %3078 = vsyncadd (!%p2796_p5), %s2351_s20, 4294967168  ;;  %s27_s14 = sadd.s32 1, %s3101_s14   ;;  %s3621_s30 = smov %s3085_s10 }
 0x728   : > { %p24_p8 = scmp.ge.s32.totalorder %s27_s14, 4   ;;  %s3622_s10 = smov %s3089_s11 }
 0x729   : > { %s3623_s11 = smov %s3355_s29  ;;  %s3624_s12 = smov %s3097_s13 }
 0x72a   : > { %s3625_s13 = smov %s3627_s18  ;;  %26 = sbr.rel (!%p24_p8) target bundleno = 12 (0xc), region = 219 }
 0x731   :  { %2356 = vsyncpa [#allocation5], 1 }
 0x732   :  { %2358 = vsyncpa [#allocation5 + $0x1], 1 }
 0x733   :  { %2359 = vsyncpa [#allocation8], 1 }
 0x734   :  { %2360 = vsyncpa [#allocation11], 1 }
 0x735   :  { %2361 = vsyncpa [#allocation6], 1 }
 0x736   :  { %2363 = vsyncpa [#allocation6 + $0x1], 1 }

</bundles_post_ra>
